<compile_context>
chip_gen: v5e
topology: v5e:2x2
jax: 0.10.0
libtpu: 0.0.40
codegen_flags: <defaults>
</compile_context>

<pallas_src>
import functools

import jax
import jax.numpy as jnp
from jax import lax
from jax.experimental import pallas as pl
from jax.experimental.pallas import tpu as pltpu

LANES = 128
ROW_QUANTUM = 16        # block rows legal for both f32 (8,128) and bf16 (16,128) tiling
CHUNK_ROWS = 256        # rows folded per fori_loop iteration (keeps live set in vregs)
MAX_BLOCK_ROWS = 4096   # 4096x128 f32 = 2 MiB per input buffer; 8 MiB double-buffered
ACC_ROWS = 4 * 8        # four (8,128) partial-sum slabs stacked: bce, p*t, p, t


def _cdiv(a, b):
    return -(-a // b)


def _round_up(a, m):
    return _cdiv(a, m) * m


def _accumulate_block(x_ref, t_ref, acc_ref, chunk_rows, mask_info):
    """Fold one (block_rows, 128) block into the persistent (32, 128) accumulator."""
    block_rows, lanes = x_ref.shape
    num_chunks = block_rows // chunk_rows

    def chunk_sums(c, carry):
        a_bce, a_pt, a_p, a_t = carry
        r0 = c * chunk_rows
        if not isinstance(r0, int):
            r0 = pl.multiple_of(r0, chunk_rows)
        x = x_ref[pl.ds(r0, chunk_rows), :].astype(jnp.float32)
        t = t_ref[pl.ds(r0, chunk_rows), :].astype(jnp.float32)

        if mask_info is not None:
            # Only the boundary block pays for the validity mask: rows past the
            # flattened array contain undefined data (Pallas OOB block reads)
            # and zero-padded tail lanes must not contribute.
            n_valid, block_row0 = mask_info
            full_rows = n_valid // lanes            # compile-time constants
            rem = n_valid % lanes
            grow = (lax.broadcasted_iota(jnp.int32, (chunk_rows, lanes), 0)
                    + block_row0 + r0)
            col = lax.broadcasted_iota(jnp.int32, (chunk_rows, lanes), 1)
            m = (grow < full_rows) | ((grow == full_rows) & (col < rem))
            t = jnp.where(m, t, 0.0)

        # Numerically stable BCE-with-logits; sigmoid via a single EUP tanh.
        e = jnp.exp(-jnp.abs(x))                                # EUP
        bce = jnp.maximum(x, 0.0) - x * t + jnp.log1p(e)        # == F.bce_with_logits
        p = 0.5 * jnp.tanh(0.5 * x) + 0.5                       # sigmoid(x)

        if mask_info is not None:
            bce = jnp.where(m, bce, 0.0)   # also squashes NaN/Inf from garbage rows
            p = jnp.where(m, p, 0.0)

        def fold(v):  # (chunk_rows, 128) -> (8, 128): pure sublane-block VPU adds
            return v.reshape(chunk_rows // 8, 8, lanes).sum(axis=0)

        return (a_bce + fold(bce), a_pt + fold(p * t),
                a_p + fold(p), a_t + fold(t))

    zero = jnp.zeros((8, lanes), jnp.float32)
    init = (zero, zero, zero, zero)
    if num_chunks == 1:
        a_bce, a_pt, a_p, a_t = chunk_sums(0, init)
    else:
        a_bce, a_pt, a_p, a_t = lax.fori_loop(0, num_chunks, chunk_sums, init)

    acc_ref[0:8, :] += a_bce
    acc_ref[8:16, :] += a_pt
    acc_ref[16:24, :] += a_p
    acc_ref[24:32, :] += a_t


def combo_loss_kernel(x_ref, t_ref, acc_ref, *, n_valid, chunk_rows, num_steps,
                      needs_mask):
    step = pl.program_id(0)
    block_rows = x_ref.shape[0]

    # Output block is revisited across the whole grid -> init once.
    @pl.when(step == 0)
    def _():
        acc_ref[...] = jnp.zeros_like(acc_ref)

    if not needs_mask:
        _accumulate_block(x_ref, t_ref, acc_ref, chunk_rows, None)
    elif num_steps == 1:
        _accumulate_block(x_ref, t_ref, acc_ref, chunk_rows,
                          (n_valid, step * block_rows))
    else:
        last = num_steps - 1

        @pl.when(step < last)
        def _():
            _accumulate_block(x_ref, t_ref, acc_ref, chunk_rows, None)

        @pl.when(step == last)
        def _():
            _accumulate_block(x_ref, t_ref, acc_ref, chunk_rows,
                              (n_valid, step * block_rows))


@functools.partial(jax.jit, static_argnames=("alpha", "smooth"))
def combo_loss(pred, target, alpha=0.5, smooth=1e-6):
    assert pred.shape == target.shape
    n = pred.size

    flat_x = pred.reshape(-1)
    flat_t = target.reshape(-1)
    lane_pad = (-n) % LANES
    if lane_pad:
        # TODO(synk): rare ragged-lane path (n % 128 != 0) costs one pad copy per
        # input; a manual-DMA ragged kernel over the flat HBM buffer would avoid it.
        flat_x = jnp.pad(flat_x, (0, lane_pad))
        flat_t = jnp.pad(flat_t, (0, lane_pad))
    rows = (n + lane_pad) // LANES

    # Zero-copy, lane-dense reshape in the common case (n % 128 == 0).
    # Native dtypes (bf16 preds / bool-int8 targets) pass straight through the
    # DMA; the kernel casts to f32 in VMEM.
    x = flat_x.reshape(rows, LANES)
    t = flat_t.reshape(rows, LANES)

    if rows <= CHUNK_ROWS:
        block_rows = _round_up(rows, ROW_QUANTUM)
        chunk_rows = block_rows
    else:
        block_rows = min(MAX_BLOCK_ROWS, _round_up(rows, CHUNK_ROWS))
        chunk_rows = CHUNK_ROWS
    steps = _cdiv(rows, block_rows)
    needs_mask = (lane_pad != 0) or (rows % block_rows != 0)

    kernel = functools.partial(
        combo_loss_kernel, n_valid=n, chunk_rows=chunk_rows, num_steps=steps,
        needs_mask=needs_mask)

    acc = pl.pallas_call(
        kernel,
        out_shape=jax.ShapeDtypeStruct((ACC_ROWS, LANES), jnp.float32),
        grid=(steps,),
        in_specs=[
            pl.BlockSpec((block_rows, LANES), lambda i: (i, 0)),
            pl.BlockSpec((block_rows, LANES), lambda i: (i, 0)),
        ],
        out_specs=pl.BlockSpec((ACC_ROWS, LANES), lambda i: (0, 0)),
        compiler_params=pltpu.CompilerParams(
            dimension_semantics=("arbitrary",),   # accumulator revisited every step
        ),
    )(x, t)

    # Tiny (32,128) -> 4 scalars reduce + scalar combine in plain JAX.
    sums = acc.reshape(4, 8, LANES).sum(axis=(1, 2))
    bce_sum, pt_sum, p_sum, t_sum = sums[0], sums[1], sums[2], sums[3]

    bce_mean = bce_sum / n   # F.binary_cross_entropy_with_logits reduction='mean'
    dice = (2.0 * pt_sum + smooth) / (p_sum + t_sum + smooth)
    return alpha * bce_mean + (1.0 - alpha) * (1.0 - dice)


def combo_loss_ref(pred, target, alpha=0.5, smooth=1e-6):
    # pure-JAX reference for verification
    x = pred.astype(jnp.float32)
    t = target.astype(jnp.float32)
    bce = jnp.mean(jnp.maximum(x, 0.0) - x * t + jnp.log1p(jnp.exp(-jnp.abs(x))))
    p = jax.nn.sigmoid(x)
    inter = jnp.sum(p * t)
    dice = (2.0 * inter + smooth) / (jnp.sum(p) + jnp.sum(t) + smooth)
    return alpha * bce + (1.0 - alpha) * (1.0 - dice)


if __name__ == "__main__":
    key = jax.random.PRNGKey(0)
    k1, k2 = jax.random.split(key)
    # small shapes consistent with a segmentation logit/mask pair (NCHW)
    pred = jax.random.normal(k1, (2, 4, 16, 16), dtype=jnp.float32)
    target = (jax.random.uniform(k2, (2, 4, 16, 16)) > 0.5).astype(jnp.float32)

    out = combo_loss(pred, target, alpha=0.5, smooth=1e-6)
    out = jax.block_until_ready(out)

    ref = combo_loss_ref(pred, target, alpha=0.5, smooth=1e-6)
    assert jnp.allclose(out, ref, rtol=1e-4, atol=1e-5), (out, ref)

    print("KERNEL_OK")
</pallas_src>

<mosaic_0001>
module attributes {stable_mosaic.version = 11 : i64} {
  func.func @combo_loss_kernel(%arg0: i32, %arg1: memref<16x128xf32, #tpu.memory_space<vmem>>, %arg2: memref<16x128xf32, #tpu.memory_space<vmem>>, %arg3: memref<32x128xf32, #tpu.memory_space<vmem>>) attributes {dimension_semantics = [#tpu.dimension_semantics<arbitrary>], iteration_bounds = array<i64: 1>, scalar_prefetch = 0 : i64, scratch_operands = 0 : i64, tpu.core_type = #tpu.core_type<tc>, window_params = [{transform_indices = @transform_0, window_bounds = array<i64: 16, 128>}, {transform_indices = @transform_1, window_bounds = array<i64: 16, 128>}, {pipeline_mode = #tpu.pipeline_mode<synchronous>, transform_indices = @transform_2, window_bounds = array<i64: 32, 128>}]} {
    %c0_i32 = arith.constant 0 : i32
    %0 = arith.cmpi eq, %arg0, %c0_i32 : i32
    %1 = arith.extui %0 : i1 to i32
    %c0_i32_0 = arith.constant 0 : i32
    %2 = arith.cmpi ne, %1, %c0_i32_0 : i32
    scf.if %2 {
      %cst_26 = arith.constant 0.000000e+00 : f32
      %48 = vector.broadcast %cst_26 : f32 to vector<32x128xf32>
      %c0_27 = arith.constant 0 : index
      %c0_28 = arith.constant 0 : index
      %49 = vector.load %arg3[%c0_27, %c0_28] : memref<32x128xf32, #tpu.memory_space<vmem>>, vector<32x128xf32>
      tpu.vector_store %arg3[%c0_27, %c0_28], %48 {strides = array<i32>} : memref<32x128xf32, #tpu.memory_space<vmem>>, vector<32x128xf32>,
    } else {
    }
    %cst = arith.constant 0.000000e+00 : f32
    %3 = vector.broadcast %cst : f32 to vector<8x128xf32>
    %c0 = arith.constant 0 : index
    %c0_1 = arith.constant 0 : index
    %4 = vector.load %arg1[%c0, %c0_1] : memref<16x128xf32, #tpu.memory_space<vmem>>, vector<16x128xf32>
    %c0_2 = arith.constant 0 : index
    %c0_3 = arith.constant 0 : index
    %5 = vector.load %arg2[%c0_2, %c0_3] : memref<16x128xf32, #tpu.memory_space<vmem>>, vector<16x128xf32>
    %6 = math.absf %4 : vector<16x128xf32>
    %cst_4 = arith.constant 0.000000e+00 : f32
    %7 = vector.broadcast %cst_4 : f32 to vector<16x128xf32>
    %8 = arith.subf %7, %6 : vector<16x128xf32>
    %9 = math.exp %8 : vector<16x128xf32>
    %cst_5 = arith.constant 0.000000e+00 : f32
    %10 = vector.broadcast %cst_5 : f32 to vector<16x128xf32>
    %11 = arith.maximumf %4, %10 : vector<16x128xf32>
    %12 = arith.mulf %4, %5 : vector<16x128xf32>
    %13 = arith.subf %11, %12 : vector<16x128xf32>
    %14 = math.log1p %9 : vector<16x128xf32>
    %15 = arith.addf %13, %14 : vector<16x128xf32>
    %cst_6 = arith.constant 5.000000e-01 : f32
    %16 = vector.broadcast %cst_6 : f32 to vector<16x128xf32>
    %17 = arith.mulf %16, %4 : vector<16x128xf32>
    %18 = math.tanh %17 : vector<16x128xf32>
    %cst_7 = arith.constant 5.000000e-01 : f32
    %19 = vector.broadcast %cst_7 : f32 to vector<16x128xf32>
    %20 = arith.mulf %19, %18 : vector<16x128xf32>
    %cst_8 = arith.constant 5.000000e-01 : f32
    %21 = vector.broadcast %cst_8 : f32 to vector<16x128xf32>
    %22 = arith.addf %20, %21 : vector<16x128xf32>
    %23 = vector.shape_cast %15 : vector<16x128xf32> to vector<2x8x128xf32>
    %cst_9 = arith.constant dense<0.000000e+00> : vector<8x128xf32>
    %24 = vector.multi_reduction <add>, %23, %cst_9 [0] : vector<2x8x128xf32> to vector<8x128xf32>
    %25 = arith.addf %3, %24 : vector<8x128xf32>
    %26 = arith.mulf %22, %5 : vector<16x128xf32>
    %27 = vector.shape_cast %26 : vector<16x128xf32> to vector<2x8x128xf32>
    %cst_10 = arith.constant dense<0.000000e+00> : vector<8x128xf32>
    %28 = vector.multi_reduction <add>, %27, %cst_10 [0] : vector<2x8x128xf32> to vector<8x128xf32>
    %29 = arith.addf %3, %28 : vector<8x128xf32>
    %30 = vector.shape_cast %22 : vector<16x128xf32> to vector<2x8x128xf32>
    %cst_11 = arith.constant dense<0.000000e+00> : vector<8x128xf32>
    %31 = vector.multi_reduction <add>, %30, %cst_11 [0] : vector<2x8x128xf32> to vector<8x128xf32>
    %32 = arith.addf %3, %31 : vector<8x128xf32>
    %33 = vector.shape_cast %5 : vector<16x128xf32> to vector<2x8x128xf32>
    %cst_12 = arith.constant dense<0.000000e+00> : vector<8x128xf32>
    %34 = vector.multi_reduction <add>, %33, %cst_12 [0] : vector<2x8x128xf32> to vector<8x128xf32>
    %35 = arith.addf %3, %34 : vector<8x128xf32>
    %c0_13 = arith.constant 0 : index
    %c0_14 = arith.constant 0 : index
    %36 = vector.load %arg3[%c0_13, %c0_14] : memref<32x128xf32, #tpu.memory_space<vmem>>, vector<8x128xf32>
    %37 = arith.addf %36, %25 : vector<8x128xf32>
    %c0_15 = arith.constant 0 : index
    %c0_16 = arith.constant 0 : index
    %38 = vector.load %arg3[%c0_15, %c0_16] : memref<32x128xf32, #tpu.memory_space<vmem>>, vector<8x128xf32>
    tpu.vector_store %arg3[%c0_15, %c0_16], %37 {strides = array<i32>} : memref<32x128xf32, #tpu.memory_space<vmem>>, vector<8x128xf32>,
    %c8 = arith.constant 8 : index
    %c0_17 = arith.constant 0 : index
    %39 = vector.load %arg3[%c8, %c0_17] : memref<32x128xf32, #tpu.memory_space<vmem>>, vector<8x128xf32>
    %40 = arith.addf %39, %29 : vector<8x128xf32>
    %c8_18 = arith.constant 8 : index
    %c0_19 = arith.constant 0 : index
    %41 = vector.load %arg3[%c8_18, %c0_19] : memref<32x128xf32, #tpu.memory_space<vmem>>, vector<8x128xf32>
    tpu.vector_store %arg3[%c8_18, %c0_19], %40 {strides = array<i32>} : memref<32x128xf32, #tpu.memory_space<vmem>>, vector<8x128xf32>,
    %c16 = arith.constant 16 : index
    %c0_20 = arith.constant 0 : index
    %42 = vector.load %arg3[%c16, %c0_20] : memref<32x128xf32, #tpu.memory_space<vmem>>, vector<8x128xf32>
    %43 = arith.addf %42, %32 : vector<8x128xf32>
    %c16_21 = arith.constant 16 : index
    %c0_22 = arith.constant 0 : index
    %44 = vector.load %arg3[%c16_21, %c0_22] : memref<32x128xf32, #tpu.memory_space<vmem>>, vector<8x128xf32>
    tpu.vector_store %arg3[%c16_21, %c0_22], %43 {strides = array<i32>} : memref<32x128xf32, #tpu.memory_space<vmem>>, vector<8x128xf32>,
    %c24 = arith.constant 24 : index
    %c0_23 = arith.constant 0 : index
    %45 = vector.load %arg3[%c24, %c0_23] : memref<32x128xf32, #tpu.memory_space<vmem>>, vector<8x128xf32>
    %46 = arith.addf %45, %35 : vector<8x128xf32>
    %c24_24 = arith.constant 24 : index
    %c0_25 = arith.constant 0 : index
    %47 = vector.load %arg3[%c24_24, %c0_25] : memref<32x128xf32, #tpu.memory_space<vmem>>, vector<8x128xf32>
    tpu.vector_store %arg3[%c24_24, %c0_25], %46 {strides = array<i32>} : memref<32x128xf32, #tpu.memory_space<vmem>>, vector<8x128xf32>,
    return
  }
  func.func @transform_0(%arg0: i32) -> (i32, i32) {
    %c0_i32 = arith.constant 0 : i32
    %c0_i32_0 = arith.constant 0 : i32
    return %arg0, %c0_i32 : i32, i32
  }
  func.func @transform_1(%arg0: i32) -> (i32, i32) {
    %c0_i32 = arith.constant 0 : i32
    %c0_i32_0 = arith.constant 0 : i32
    return %arg0, %c0_i32 : i32, i32
  }
  func.func @transform_2(%arg0: i32) -> (i32, i32) {
    %c0_i32 = arith.constant 0 : i32
    %c0_i32_0 = arith.constant 0 : i32
    %c0_i32_1 = arith.constant 0 : i32
    return %c0_i32, %c0_i32_0 : i32, i32
  }
}

</mosaic_0001>

<bundles_post_ra>
// kernel: combo_loss.1
= control target key start
LH: loop header
LB: loop body
LE: loop exit
PB: predicated region body
PF: predicated region fallthrough
CT: control target
= control target key end

     0   :  { %s143_s0 = inlined_call_operand.vmem [shape: f32[16,128], index: 0, kind: input, shape index: {}]   ;;  %s144_s1 = inlined_call_operand.vmem [shape: f32[16,128], index: 1, kind: input, shape index: {}]   ;;  %s145_s2 = inlined_call_operand.vmem [shape: f32[32,128], index: 2, kind: output, shape index: {}]  }
   0x1   :  { %v19_v0 = vld [vmem:[%s143_s0] sm:$0xff]  ;;  %v20_v1 = vld [vmem:[%s143_s0 + $0x8] sm:$0xff] }
   0x2   :  { %v23_v2 = vand.u32 2147483647, %v19_v0  ;;  %v24_v3 = vand.u32 2147483647, %v20_v1  ;;  %v21_v4 = vld [vmem:[%s144_s1] sm:$0xff]  ;;  %v22_v5 = vld [vmem:[%s144_s1 + $0x8] sm:$0xff] }
   0x3   :  { %v57_v6 = vmul.f32 0.5, %v19_v0  ;;  %v58_v7 = vmul.f32 0.5, %v20_v1  ;;  %v73_v10 = vadd.f32 %v22_v5, %v21_v4  ;;  %v31_v27 = vmax.f32 %v19_v0, 0.0 }
   0x4   :  { %v25_v8 = vsub.f32 0.0, %v23_v2  ;;  %v26_v9 = vsub.f32 0.0, %v24_v3  ;;  %v33_v30 = vmul.f32 %v21_v4, %v19_v0  ;;  %v32_v34 = vmax.f32 %v20_v1, 0.0 }
   0x5   :  { %92 = vtanh.f32 %v57_v6  ;;  %86 = vst [vmem:[%s145_s2 + $0x18] sm:$0xff] %v73_v10  ;;  %v34_v35 = vmul.f32 %v22_v5, %v20_v1 }
   0x6   :  { %v27_v11 = vmul.f32 1.442695, %v25_v8  ;;  %v29_v12 = vmul.f32 1.442695, %v26_v9  ;;  %94 = vtanh.f32 %v58_v7  ;;  %v35_v39 = vsub.f32 %v31_v27, %v33_v30 }
   0x7   :  { %v36_v42 = vsub.f32 %v32_v34, %v34_v35 }
   0x8   :  { %96 = vpow2.f32 %v27_v11 }
   0x9   :  { %98 = vpow2.f32 %v29_v12 }
   0xb   :  { %v93_v13 = vpop.eup %92 }
   0xc   :  { %v95_v14 = vpop.eup %94  ;;  %v61_v15 = vmul.f32 0.5, %v93_v13 }
   0xd   :  { %v62_v16 = vmul.f32 0.5, %v95_v14 }
   0xe   :  { %v97_v17 = vpop.eup %96  ;;  %v63_v18 = vadd.f32 0.5, %v61_v15 }
   0xf   :  { %v99_v19 = vpop.eup %98  ;;  %v37_v20 = vadd.f32 1.0, %v97_v17  ;;  %v40_v21 = vmul.f32 -0.5, %v97_v17  ;;  %v64_v22 = vadd.f32 0.5, %v62_v16  ;;  %v43_v31 = vand.u32 2147483647, %v97_v17 }
  0x10   :  { %v46_v23 = vadd.f32 1.0, %v99_v19  ;;  %v49_v24 = vmul.f32 -0.5, %v99_v19  ;;  %v67_v25 = vmul.f32 %v63_v18, %v21_v4  ;;  %v52_v36 = vand.u32 2147483647, %v99_v19 }
  0x11   :  { %100 = vlog2.f32 %v37_v20  ;;  %v68_v26 = vmul.f32 %v64_v22, %v22_v5  ;;  %v41_v28 = vadd.f32 1.0, %v40_v21  ;;  %v71_v29 = vadd.f32 %v64_v22, %v63_v18 }
  0x12   :  { %102 = vlog2.f32 %v46_v23  ;;  %v50_v32 = vadd.f32 1.0, %v49_v24  ;;  %vm44_vm0 = vcmp.lt.f32.partialorder %v43_v31, 0.0004427343  ;;  %vm53_vm1 = vcmp.lt.f32.partialorder %v52_v36, 0.0004427343 }
  0x13   :  { %v69_v33 = vadd.f32 %v68_v26, %v67_v25  ;;  %v42_v37 = vmul.f32 %v97_v17, %v41_v28  ;;  %83 = vst [vmem:[%s145_s2 + $0x10] sm:$0xff] %v71_v29 }
  0x14   :  { %v51_v40 = vmul.f32 %v99_v19, %v50_v32 }
  0x15   :  { %80 = vst [vmem:[%s145_s2 + $0x8] sm:$0xff] %v69_v33 }
  0x17   :  { %v101_v38 = vpop.eup %100 }
  0x18   :  { %v103_v41 = vpop.eup %102  ;;  %v39_v43 = vmul.f32 0.6931472, %v101_v38 }
  0x19   :  { %v48_v44 = vmul.f32 0.6931472, %v103_v41 }
  0x1a   :  { %v45_v45 = vsel %vm44_vm0, %v42_v37, %v39_v43 }
  0x1b   :  { %v54_v46 = vsel %vm53_vm1, %v51_v40, %v48_v44  ;;  %v55_v47 = vadd.f32 %v45_v45, %v35_v39 }
  0x1c   :  { %v56_v48 = vadd.f32 %v54_v46, %v36_v42 }
  0x1e   :  { %v65_v49 = vadd.f32 %v56_v48, %v55_v47 }
  0x20   :  { %77 = vst [vmem:[%s145_s2] sm:$0xff] %v65_v49 }

</bundles_post_ra>
